<compile_context>
chip_gen: v6e
topology: v6e:2x2x1
jax: 0.10.0
libtpu: 0.0.40
codegen_flags: <defaults>
</compile_context>

<pallas_src>
import functools

import numpy as np

import jax
import jax.numpy as jnp
from jax.experimental import pallas as pl
from jax.experimental.pallas import tpu as pltpu


def _round_up(x, m):
    return ((x + m - 1) // m) * m


def _choose_batch_tile(b_pad, block_batch, max_feat, act_itemsize,
                       act_tile_budget_bytes=512 * 1024):
    """Pick a batch tile: multiple of 128 that divides b_pad.

    Large enough that the (TB, D) DMA amortizes grid-step overhead, small
    enough that the live (max_feat, TB) activation stays within the spill
    budget, and <= b_pad // 2 whenever possible so v7x gets >= 2 parallel
    grid tiles.
    """
    n128 = b_pad // 128
    cap = max(block_batch, 128)
    cap = min(cap, max(128, act_tile_budget_bytes // max(max_feat * act_itemsize, 1)))
    target = max(min(cap // 128, n128), 1)
    if n128 >= 2:                       # v7x: give both TensorCores work
        target = min(target, max(n128 // 2, 1))
    k = 1
    for d in range(1, target + 1):
        if n128 % d == 0:
            k = d
    return 128 * k


def _make_mlp_kernel(num_rest_layers, act_dtype):
    """Kernel body: feature-major (features, TB) activations, batch on lanes."""

    def kernel(x_ref, t_ref, *refs):
        # refs = (w0x, w0t, b0, w1, b1, ..., w_last, b_last, out_ref)
        out_ref = refs[-1]
        p = refs[:-1]
        w0x_ref, w0t_ref, b0_ref = p[0], p[1], p[2]

        # (TB, D) -> (D, TB): f32 transpose on the idle XLU; cast after.
        xT = x_ref[...].T.astype(act_dtype)
        tT = t_ref[...]                                        # (1, TB) f32

        # Layer 0: concat([x, t]) @ W0.T + b0  ==  W0x @ xT + w0t * t + b0
        acc = jnp.dot(w0x_ref[...], xT, preferred_element_type=jnp.float32)
        acc = acc + w0t_ref[...].astype(jnp.float32) * tT      # keep t in f32
        h = jnp.maximum(acc.astype(act_dtype) + b0_ref[...], 0)

        for layer in range(num_rest_layers):
            w_ref = p[3 + 2 * layer]
            b_ref = p[4 + 2 * layer]
            acc = jnp.dot(w_ref[...], h, preferred_element_type=jnp.float32)
            h = acc.astype(act_dtype) + b_ref[...]
            if layer < num_rest_layers - 1:                    # no ReLU last
                h = jnp.maximum(h, 0)

        # (D_out, TB) -> (TB, D_out); transpose in f32 (best-supported path).
        out_ref[...] = h.astype(jnp.float32).T.astype(out_ref.dtype)

    return kernel


def init_mlp_params(key, input_dim, hidden_dim, num_layers):
    """PyTorch nn.Linear-style init; weights stored (out_features, in_features)."""
    dims = [input_dim + 1] + [hidden_dim] * num_layers + [input_dim]
    params = []
    for i in range(len(dims) - 1):
        fan_in, fan_out = dims[i], dims[i + 1]
        key, wk, bk = jax.random.split(key, 3)
        bound = float(1.0 / (fan_in ** 0.5))
        w = jax.random.uniform(wk, (fan_out, fan_in), jnp.float32, -bound, bound)
        b = jax.random.uniform(bk, (fan_out, 1), jnp.float32, -bound, bound)
        params.append((w, b))
    return params


def prepare_params(params, input_dim, compute_dtype=jnp.float32):
    """One-time (outside jit) layer-0 split + dtype cast: no per-call weight
    slicing/casting HBM traffic inside the jitted forward."""
    (w0, b0), *rest = params
    flat = [w0[:, :input_dim].astype(compute_dtype),              # (H, D)
            w0[:, input_dim:input_dim + 1].astype(compute_dtype),  # (H, 1)
            b0.astype(compute_dtype)]
    for w, b in rest:
        flat.append(w.astype(compute_dtype))
        flat.append(b.astype(compute_dtype))
    return tuple(flat)


@functools.partial(jax.jit,
                   static_argnames=("block_batch", "compute_dtype", "out_dtype"))
def mlp_diffusion_forward(x, t, flat_params, *, block_batch=4096,
                          compute_dtype=jnp.float32, out_dtype=jnp.float32):
    """x: (B, D) f32, t: (B,) f32, flat_params from prepare_params -> (B, D_out)."""
    B, D = x.shape
    num_rest = (len(flat_params) - 3) // 2
    D_out = flat_params[-2].shape[0]
    weight_arrays = ([flat_params[0], flat_params[1]]
                     + [flat_params[3 + 2 * i] for i in range(num_rest)])
    max_feat = max(max(int(w.shape[0]) for w in weight_arrays), D, 8)

    act_itemsize = np.dtype(compute_dtype).itemsize
    out_itemsize = np.dtype(out_dtype).itemsize

    # Pad the batch only to a 128 boundary (not to the tile) and pick a tile
    # that divides the padded batch.
    B_pad = _round_up(B, 128)
    tb = _choose_batch_tile(B_pad, block_batch, max_feat, act_itemsize)
    num_tiles = B_pad // tb

    tT = t.astype(jnp.float32).reshape(1, B)                    # t stays f32
    x_in = x
    if B_pad != B:
        x_in = jnp.pad(x_in, ((0, B_pad - B), (0, 0)))
        tT = jnp.pad(tT, ((0, 0), (0, B_pad - B)))

    # x / t tiles: batch-major, default double-buffered pipelining.
    in_specs = [pl.BlockSpec((tb, D), lambda i: (i, 0)),
                pl.BlockSpec((1, tb), lambda i: (0, i))]
    # Weights/biases are grid-invariant: single-buffer them so the resident
    # footprint is 1x the parameter bytes (VMEM budget for scaled hidden_dim).
    for prm in flat_params:
        in_specs.append(pl.BlockSpec(prm.shape, lambda i: (0, 0),
                                     pipeline_mode=pl.Buffered(1)))
    out_spec = pl.BlockSpec((tb, D_out), lambda i: (i, 0))
    out_shape = jax.ShapeDtypeStruct((B_pad, D_out), out_dtype)

    # Explicit VMEM budget from the actual resident set (+2x headroom).
    param_bytes = sum(int(p.size) * p.dtype.itemsize for p in flat_params)
    tile_bytes = 2 * (tb * D * x.dtype.itemsize + tb * 4
                      + tb * D_out * out_itemsize)
    act_bytes = (4 + act_itemsize) * max_feat * tb + 8 * D * tb
    vmem_limit = int(min(max(2 * (param_bytes + tile_bytes + act_bytes),
                             32 * 1024 * 1024),
                         100 * 1024 * 1024))

    flops = sum(2 * B_pad * int(w.size) for w in weight_arrays)
    bytes_accessed = (int(x_in.size) * x_in.dtype.itemsize
                      + int(tT.size) * 4
                      + param_bytes
                      + B_pad * D_out * out_itemsize)

    kernel = _make_mlp_kernel(num_rest, compute_dtype)

    out = pl.pallas_call(
        kernel,
        out_shape=out_shape,
        grid=(num_tiles,),
        in_specs=in_specs,
        out_specs=out_spec,
        compiler_params=pltpu.CompilerParams(
            dimension_semantics=("parallel",),
            vmem_limit_bytes=vmem_limit),
        cost_estimate=pl.CostEstimate(flops=flops, transcendentals=0,
                                      bytes_accessed=bytes_accessed),
    )(x_in, tT, *flat_params)

    return out[:B]


def mlp_diffusion_reference(x, t, params):
    """Pure-JAX reference matching the PyTorch forward (f32)."""
    h = jnp.concatenate([x, t[:, None]], axis=-1)
    n = len(params)
    for i, (w, b) in enumerate(params):
        h = h @ w.T + b[:, 0]
        if i < n - 1:
            h = jnp.maximum(h, 0.0)
    return h


if __name__ == "__main__":
    input_dim = 16
    hidden_dim = 32
    num_layers = 3
    batch = 8

    key = jax.random.PRNGKey(0)
    key, xk, tk, pk = jax.random.split(key, 4)
    x = jax.random.normal(xk, (batch, input_dim), jnp.float32)
    t = jax.random.uniform(tk, (batch,), jnp.float32)
    params = init_mlp_params(pk, input_dim, hidden_dim, num_layers)

    ref = mlp_diffusion_reference(x, t, params)

    # Default f32 path: matches the PyTorch/JAX reference.
    fp32_params = prepare_params(params, input_dim, jnp.float32)
    out = jax.block_until_ready(mlp_diffusion_forward(x, t, fp32_params))
    assert out.shape == (batch, input_dim), out.shape
    assert jnp.allclose(out, ref, atol=1e-4, rtol=1e-4), float(
        jnp.max(jnp.abs(out - ref)))

    # Optional bf16 weights/activations (documented accuracy/perf trade-off):
    # halves resident-weight VMEM and activation/spill traffic on v6e/v7x
    # (keep f32 on v5e -- no bf16 VPU).  t stays f32 on this path too.
    bf16_params = prepare_params(params, input_dim, jnp.bfloat16)
    out_bf16 = jax.block_until_ready(
        mlp_diffusion_forward(x, t, bf16_params, compute_dtype=jnp.bfloat16))
    assert out_bf16.shape == (batch, input_dim), out_bf16.shape
    assert jnp.allclose(out_bf16, ref, atol=2e-1, rtol=2e-1), float(
        jnp.max(jnp.abs(out_bf16 - ref)))

    print("KERNEL_OK")
</pallas_src>

<mosaic_0001>
module attributes {stable_mosaic.version = 11 : i64} {
  func.func @kernel(%arg0: i32, %arg1: memref<128x16xf32, #tpu.memory_space<vmem>>, %arg2: memref<1x128xf32, #tpu.memory_space<vmem>>, %arg3: memref<32x16xf32, #tpu.memory_space<vmem>>, %arg4: memref<32x1xf32, #tpu.memory_space<vmem>>, %arg5: memref<32x1xf32, #tpu.memory_space<vmem>>, %arg6: memref<32x32xf32, #tpu.memory_space<vmem>>, %arg7: memref<32x1xf32, #tpu.memory_space<vmem>>, %arg8: memref<32x32xf32, #tpu.memory_space<vmem>>, %arg9: memref<32x1xf32, #tpu.memory_space<vmem>>, %arg10: memref<16x32xf32, #tpu.memory_space<vmem>>, %arg11: memref<16x1xf32, #tpu.memory_space<vmem>>, %arg12: memref<128x16xf32, #tpu.memory_space<vmem>>) attributes {dimension_semantics = [#tpu.dimension_semantics<parallel>], iteration_bounds = array<i64: 1>, scalar_prefetch = 0 : i64, scratch_operands = 0 : i64, tpu.core_type = #tpu.core_type<tc>, window_params = [{transform_indices = @transform_0, window_bounds = array<i64: 128, 16>}, {transform_indices = @transform_1, window_bounds = array<i64: 1, 128>}, {pipeline_mode = #tpu.pipeline_mode<synchronous>, transform_indices = @transform_2, window_bounds = array<i64: 32, 16>}, {pipeline_mode = #tpu.pipeline_mode<synchronous>, transform_indices = @transform_3, window_bounds = array<i64: 32, 1>}, {pipeline_mode = #tpu.pipeline_mode<synchronous>, transform_indices = @transform_4, window_bounds = array<i64: 32, 1>}, {pipeline_mode = #tpu.pipeline_mode<synchronous>, transform_indices = @transform_5, window_bounds = array<i64: 32, 32>}, {pipeline_mode = #tpu.pipeline_mode<synchronous>, transform_indices = @transform_6, window_bounds = array<i64: 32, 1>}, {pipeline_mode = #tpu.pipeline_mode<synchronous>, transform_indices = @transform_7, window_bounds = array<i64: 32, 32>}, {pipeline_mode = #tpu.pipeline_mode<synchronous>, transform_indices = @transform_8, window_bounds = array<i64: 32, 1>}, {pipeline_mode = #tpu.pipeline_mode<synchronous>, transform_indices = @transform_9, window_bounds = array<i64: 16, 32>}, {pipeline_mode = #tpu.pipeline_mode<synchronous>, transform_indices = @transform_10, window_bounds = array<i64: 16, 1>}, {transform_indices = @transform_11, window_bounds = array<i64: 128, 16>}]} {
    %c0 = arith.constant 0 : index
    %c0_0 = arith.constant 0 : index
    %0 = vector.load %arg1[%c0, %c0_0] : memref<128x16xf32, #tpu.memory_space<vmem>>, vector<128x16xf32>
    %1 = tpu.transpose %0, [1, 0] : vector<128x16xf32> -> vector<16x128xf32>
    %c0_1 = arith.constant 0 : index
    %c0_2 = arith.constant 0 : index
    %2 = vector.load %arg2[%c0_1, %c0_2] : memref<1x128xf32, #tpu.memory_space<vmem>>, vector<1x128xf32>
    %c0_3 = arith.constant 0 : index
    %c0_4 = arith.constant 0 : index
    %3 = vector.load %arg3[%c0_3, %c0_4] : memref<32x16xf32, #tpu.memory_space<vmem>>, vector<32x16xf32>
    %cst = arith.constant dense<0.000000e+00> : vector<32x128xf32>
    %4 = tpu.matmul %3, %1, %cst {dimension_numbers = #tpu.dot_dimension_numbers<[1], [0], [0], [1], [0, 0, 1, 1], [], []>} : vector<32x16xf32>, vector<16x128xf32>, vector<32x128xf32> -> vector<32x128xf32>
    %c0_5 = arith.constant 0 : index
    %c0_6 = arith.constant 0 : index
    %5 = vector.load %arg4[%c0_5, %c0_6] : memref<32x1xf32, #tpu.memory_space<vmem>>, vector<32x1xf32>
    %6 = vector.broadcast %5 : vector<32x1xf32> to vector<32x128xf32>
    %7 = vector.broadcast %2 : vector<1x128xf32> to vector<32x128xf32>
    %8 = arith.mulf %6, %7 : vector<32x128xf32>
    %9 = arith.addf %4, %8 : vector<32x128xf32>
    %c0_7 = arith.constant 0 : index
    %c0_8 = arith.constant 0 : index
    %10 = vector.load %arg5[%c0_7, %c0_8] : memref<32x1xf32, #tpu.memory_space<vmem>>, vector<32x1xf32>
    %11 = vector.broadcast %10 : vector<32x1xf32> to vector<32x128xf32>
    %12 = arith.addf %9, %11 : vector<32x128xf32>
    %cst_9 = arith.constant 0.000000e+00 : f32
    %13 = vector.broadcast %cst_9 : f32 to vector<32x128xf32>
    %14 = arith.maximumf %12, %13 : vector<32x128xf32>
    %c0_10 = arith.constant 0 : index
    %c0_11 = arith.constant 0 : index
    %15 = vector.load %arg6[%c0_10, %c0_11] : memref<32x32xf32, #tpu.memory_space<vmem>>, vector<32x32xf32>
    %cst_12 = arith.constant dense<0.000000e+00> : vector<32x128xf32>
    %16 = tpu.matmul %15, %14, %cst_12 {dimension_numbers = #tpu.dot_dimension_numbers<[1], [0], [0], [1], [0, 0, 1, 1], [], []>} : vector<32x32xf32>, vector<32x128xf32>, vector<32x128xf32> -> vector<32x128xf32>
    %c0_13 = arith.constant 0 : index
    %c0_14 = arith.constant 0 : index
    %17 = vector.load %arg7[%c0_13, %c0_14] : memref<32x1xf32, #tpu.memory_space<vmem>>, vector<32x1xf32>
    %18 = vector.broadcast %17 : vector<32x1xf32> to vector<32x128xf32>
    %19 = arith.addf %16, %18 : vector<32x128xf32>
    %cst_15 = arith.constant 0.000000e+00 : f32
    %20 = vector.broadcast %cst_15 : f32 to vector<32x128xf32>
    %21 = arith.maximumf %19, %20 : vector<32x128xf32>
    %c0_16 = arith.constant 0 : index
    %c0_17 = arith.constant 0 : index
    %22 = vector.load %arg8[%c0_16, %c0_17] : memref<32x32xf32, #tpu.memory_space<vmem>>, vector<32x32xf32>
    %cst_18 = arith.constant dense<0.000000e+00> : vector<32x128xf32>
    %23 = tpu.matmul %22, %21, %cst_18 {dimension_numbers = #tpu.dot_dimension_numbers<[1], [0], [0], [1], [0, 0, 1, 1], [], []>} : vector<32x32xf32>, vector<32x128xf32>, vector<32x128xf32> -> vector<32x128xf32>
    %c0_19 = arith.constant 0 : index
    %c0_20 = arith.constant 0 : index
    %24 = vector.load %arg9[%c0_19, %c0_20] : memref<32x1xf32, #tpu.memory_space<vmem>>, vector<32x1xf32>
    %25 = vector.broadcast %24 : vector<32x1xf32> to vector<32x128xf32>
    %26 = arith.addf %23, %25 : vector<32x128xf32>
    %cst_21 = arith.constant 0.000000e+00 : f32
    %27 = vector.broadcast %cst_21 : f32 to vector<32x128xf32>
    %28 = arith.maximumf %26, %27 : vector<32x128xf32>
    %c0_22 = arith.constant 0 : index
    %c0_23 = arith.constant 0 : index
    %29 = vector.load %arg10[%c0_22, %c0_23] : memref<16x32xf32, #tpu.memory_space<vmem>>, vector<16x32xf32>
    %cst_24 = arith.constant dense<0.000000e+00> : vector<16x128xf32>
    %30 = tpu.matmul %29, %28, %cst_24 {dimension_numbers = #tpu.dot_dimension_numbers<[1], [0], [0], [1], [0, 0, 1, 1], [], []>} : vector<16x32xf32>, vector<32x128xf32>, vector<16x128xf32> -> vector<16x128xf32>
    %c0_25 = arith.constant 0 : index
    %c0_26 = arith.constant 0 : index
    %31 = vector.load %arg11[%c0_25, %c0_26] : memref<16x1xf32, #tpu.memory_space<vmem>>, vector<16x1xf32>
    %32 = vector.broadcast %31 : vector<16x1xf32> to vector<16x128xf32>
    %33 = arith.addf %30, %32 : vector<16x128xf32>
    %34 = tpu.transpose %33, [1, 0] : vector<16x128xf32> -> vector<128x16xf32>
    %c0_27 = arith.constant 0 : index
    %c0_28 = arith.constant 0 : index
    %35 = vector.load %arg12[%c0_27, %c0_28] : memref<128x16xf32, #tpu.memory_space<vmem>>, vector<128x16xf32>
    tpu.vector_store %arg12[%c0_27, %c0_28], %34 {strides = array<i32>} : memref<128x16xf32, #tpu.memory_space<vmem>>, vector<128x16xf32>,
    return
  }
  func.func @transform_0(%arg0: i32) -> (i32, i32) {
    %c0_i32 = arith.constant 0 : i32
    %c0_i32_0 = arith.constant 0 : i32
    return %arg0, %c0_i32 : i32, i32
  }
  func.func @transform_1(%arg0: i32) -> (i32, i32) {
    %c0_i32 = arith.constant 0 : i32
    %c0_i32_0 = arith.constant 0 : i32
    return %c0_i32, %arg0 : i32, i32
  }
  func.func @transform_2(%arg0: i32) -> (i32, i32) {
    %c0_i32 = arith.constant 0 : i32
    %c0_i32_0 = arith.constant 0 : i32
    %c0_i32_1 = arith.constant 0 : i32
    return %c0_i32, %c0_i32_0 : i32, i32
  }
  func.func @transform_3(%arg0: i32) -> (i32, i32) {
    %c0_i32 = arith.constant 0 : i32
    %c0_i32_0 = arith.constant 0 : i32
    %c0_i32_1 = arith.constant 0 : i32
    return %c0_i32, %c0_i32_0 : i32, i32
  }
  func.func @transform_4(%arg0: i32) -> (i32, i32) {
    %c0_i32 = arith.constant 0 : i32
    %c0_i32_0 = arith.constant 0 : i32
    %c0_i32_1 = arith.constant 0 : i32
    return %c0_i32, %c0_i32_0 : i32, i32
  }
  func.func @transform_5(%arg0: i32) -> (i32, i32) {
    %c0_i32 = arith.constant 0 : i32
    %c0_i32_0 = arith.constant 0 : i32
    %c0_i32_1 = arith.constant 0 : i32
    return %c0_i32, %c0_i32_0 : i32, i32
  }
  func.func @transform_6(%arg0: i32) -> (i32, i32) {
    %c0_i32 = arith.constant 0 : i32
    %c0_i32_0 = arith.constant 0 : i32
    %c0_i32_1 = arith.constant 0 : i32
    return %c0_i32, %c0_i32_0 : i32, i32
  }
  func.func @transform_7(%arg0: i32) -> (i32, i32) {
    %c0_i32 = arith.constant 0 : i32
    %c0_i32_0 = arith.constant 0 : i32
    %c0_i32_1 = arith.constant 0 : i32
    return %c0_i32, %c0_i32_0 : i32, i32
  }
  func.func @transform_8(%arg0: i32) -> (i32, i32) {
    %c0_i32 = arith.constant 0 : i32
    %c0_i32_0 = arith.constant 0 : i32
    %c0_i32_1 = arith.constant 0 : i32
    return %c0_i32, %c0_i32_0 : i32, i32
  }
  func.func @transform_9(%arg0: i32) -> (i32, i32) {
    %c0_i32 = arith.constant 0 : i32
    %c0_i32_0 = arith.constant 0 : i32
    %c0_i32_1 = arith.constant 0 : i32
    return %c0_i32, %c0_i32_0 : i32, i32
  }
  func.func @transform_10(%arg0: i32) -> (i32, i32) {
    %c0_i32 = arith.constant 0 : i32
    %c0_i32_0 = arith.constant 0 : i32
    %c0_i32_1 = arith.constant 0 : i32
    return %c0_i32, %c0_i32_0 : i32, i32
  }
  func.func @transform_11(%arg0: i32) -> (i32, i32) {
    %c0_i32 = arith.constant 0 : i32
    %c0_i32_0 = arith.constant 0 : i32
    return %arg0, %c0_i32 : i32, i32
  }
}

</mosaic_0001>

<bundles_post_ra>
// kernel: mlp_diffusion_forward.1
= control target key start
LH: loop header
LB: loop body
LE: loop exit
PB: predicated region body
PF: predicated region fallthrough
CT: control target
= control target key end

     0   :  { %vm93_vm0 = vcmask 130048   ;;  %v831_v2 = vmov 0   ;;  %vm299_vm1 = vcmask 261120   ;;  %s1149_s0 = inlined_call_operand.vmem [shape: f32[128,16], index: 0, kind: input, shape index: {}]   ;;  %s1150_s2 = inlined_call_operand.vmem [shape: f32[32,16], index: 2, kind: input, shape index: {}]   ;;  %s1151_s3 = inlined_call_operand.vmem [shape: f32[32,1], index: 3, kind: input, shape index: {}]   ;;  %s1152_s4 = inlined_call_operand.vmem [shape: f32[32,1], index: 4, kind: input, shape index: {}]   ;;  %s1153_s6 = inlined_call_operand.vmem [shape: f32[32,1], index: 6, kind: input, shape index: {}]   ;;  %s1154_s8 = inlined_call_operand.vmem [shape: f32[32,1], index: 8, kind: input, shape index: {}]   ;;  %s1155_s10 = inlined_call_operand.vmem [shape: f32[16,1], index: 10, kind: input, shape index: {}]   ;;  %s1156_s5 = inlined_call_operand.vmem [shape: f32[32,32], index: 5, kind: input, shape index: {}]   ;;  %s1157_s1 = inlined_call_operand.vmem [shape: f32[1,128], index: 1, kind: input, shape index: {}]   ;;  %s1158_s7 = inlined_call_operand.vmem [shape: f32[32,32], index: 7, kind: input, shape index: {}]   ;;  %s1159_s9 = inlined_call_operand.vmem [shape: f32[16,32], index: 9, kind: input, shape index: {}]   ;;  %s1160_s11 = inlined_call_operand.vmem [shape: f32[128,16], index: 11, kind: output, shape index: {}]  }
   0x1   :  { %v53_v0 = vld [vmem:[%s1149_s0 + $0x78] sm:$0xff]  ;;  %v52_v1 = vld [vmem:[%s1149_s0 + $0x70] sm:$0xff]  ;;  %829 = vset.pattern.permute.xlu0 %v831_v2  ;;  %830 = vset.pattern.permute.xlu1 %v831_v2  ;;  %v51_v3 = vld [vmem:[%s1149_s0 + $0x68] sm:$0xff] }
   0x2   :  { %750 = vmatprep.subr.msk.mxu0 %vm93_vm0, %v53_v0  ;;  %v55_v4 = vld [vmem:[%s1150_s2] sm:$0xff]  ;;  %v62_v5 = vld [vmem:[%s1151_s3 + $0x18] sm:$0xff]  ;;  %v60_v6 = vld [vmem:[%s1151_s3 + $0x8] sm:$0xff] }
   0x3   :  { %751 = vmatpush3.xpose.msk.msra.mxu0 %vm93_vm0, %v53_v0  ;;  %782 = vmatprep.mubr.msk.f32.mxu0 %vm93_vm0, %v55_v4  ;;  %v50_v7 = vld [vmem:[%s1149_s0 + $0x60] sm:$0xff]  ;;  %v61_v8 = vld [vmem:[%s1151_s3 + $0x10] sm:$0xff]  ;;  %v242_v9 = vld [vmem:[%s1152_s4 + $0x18] sm:$0xff] }
   0x4   :  { %752 = vmatprep.subr.msk.mxu0 %vm93_vm0, %v52_v1  ;;  %80 = vperm.xlu0 %829, %v62_v5   ;;  %v49_v10 = vld [vmem:[%s1149_s0 + $0x58] sm:$0xff]  ;;  %v59_v11 = vld [vmem:[%s1151_s3] sm:$0xff]  ;;  %v241_v12 = vld [vmem:[%s1152_s4 + $0x10] sm:$0xff] }
   0x5   :  { %70 = vperm.xlu1 %830, %v60_v6   ;;  %v48_v13 = vld [vmem:[%s1149_s0 + $0x50] sm:$0xff]  ;;  %v240_v14 = vld [vmem:[%s1152_s4 + $0x8] sm:$0xff]  ;;  %v239_v15 = vld [vmem:[%s1152_s4] sm:$0xff] }
   0x6   :  { %v47_v16 = vld [vmem:[%s1149_s0 + $0x48] sm:$0xff]  ;;  %v278_v17 = vld [vmem:[%s1153_s6 + $0x18] sm:$0xff]  ;;  %v277_v18 = vld [vmem:[%s1153_s6 + $0x10] sm:$0xff] }
   0x7   :  { %753 = vmatpush3.xpose.msk.msra.mxu0 %vm93_vm0, %v52_v1  ;;  %v46_v19 = vld [vmem:[%s1149_s0 + $0x40] sm:$0xff]  ;;  %v276_v20 = vld [vmem:[%s1153_s6 + $0x8] sm:$0xff]  ;;  %v45_v22 = vld [vmem:[%s1149_s0 + $0x38] sm:$0xff] }
   0x8   :  { %754 = vmatprep.subr.msk.mxu0 %vm93_vm0, %v51_v3  ;;  %75 = vperm.xlu0 %829, %v61_v8   ;;  %v275_v21 = vld [vmem:[%s1153_s6] sm:$0xff]  ;;  %v408_v23 = vld [vmem:[%s1154_s8 + $0x18] sm:$0xff]  ;;  %v407_v24 = vld [vmem:[%s1154_s8 + $0x10] sm:$0xff] }
   0x9   :  { %260 = vperm.xlu1 %830, %v242_v9   ;;  %v44_v25 = vld [vmem:[%s1149_s0 + $0x30] sm:$0xff]  ;;  %v406_v26 = vld [vmem:[%s1154_s8 + $0x8] sm:$0xff]  ;;  %v405_v27 = vld [vmem:[%s1154_s8] sm:$0xff] }
   0xa   :  { %v43_v28 = vld [vmem:[%s1149_s0 + $0x28] sm:$0xff]  ;;  %v532_v29 = vld [vmem:[%s1155_s10] sm:$0xff]  ;;  %v41_v32 = vld [vmem:[%s1149_s0 + $0x18] sm:$0xff] }
   0xb   :  { %755 = vmatpush3.xpose.msk.msra.mxu0 %vm93_vm0, %v51_v3  ;;  %v533_v30 = vld [vmem:[%s1155_s10 + $0x8] sm:$0xff]  ;;  %v42_v31 = vld [vmem:[%s1149_s0 + $0x20] sm:$0xff]  ;;  %v40_v33 = vld [vmem:[%s1149_s0 + $0x10] sm:$0xff] }
   0xc   :  { %756 = vmatprep.subr.msk.mxu0 %vm93_vm0, %v50_v7  ;;  %65 = vperm.xlu0 %829, %v59_v11   ;;  %v39_v34 = vld [vmem:[%s1149_s0 + $0x8] sm:$0xff]  ;;  %v38_v35 = vld [vmem:[%s1149_s0] sm:$0xff]  ;;  %v57_v37 = vld [vmem:[%s1150_s2 + $0x10] sm:$0xff] }
   0xd   :  { %255 = vperm.xlu1 %830, %v241_v12   ;;  %v56_v36 = vld [vmem:[%s1150_s2 + $0x8] sm:$0xff]  ;;  %v58_v38 = vld [vmem:[%s1150_s2 + $0x18] sm:$0xff]  ;;  %v271_v39 = vld [vmem:[%s1156_s5] sm:$0xff] }
   0xe   :  { %796 = vmatprep.mubr.msk.f32.mxu1 %vm299_vm1, %v271_v39  ;;  %v677_v43 = vld [vmem:[%s1157_s1] ss:$0 sm:$0xff]  ;;  %v272_v5 = vld [vmem:[%s1156_s5 + $0x8] sm:$0xff]  ;;  %v273_v6 = vld [vmem:[%s1156_s5 + $0x10] sm:$0xff] }
   0xf   :  { %757 = vmatpush3.xpose.msk.msra.mxu0 %vm93_vm0, %v50_v7  ;;  %v274_v7 = vld [vmem:[%s1156_s5 + $0x18] sm:$0xff]  ;;  %v401_v8 = vld [vmem:[%s1158_s7] sm:$0xff] }
  0x10   :  { %758 = vmatprep.subr.msk.mxu0 %vm93_vm0, %v49_v10  ;;  %250 = vperm.xlu0 %829, %v240_v14  }
  0x11   :  { %245 = vperm.xlu1 %830, %v239_v15  }
  0x13   :  { %759 = vmatpush3.xpose.msk.msra.mxu0 %vm93_vm0, %v49_v10 }
  0x14   :  { %760 = vmatprep.subr.msk.mxu0 %vm93_vm0, %v48_v13  ;;  %296 = vperm.xlu0 %829, %v278_v17  }
  0x15   :  { %291 = vperm.xlu1 %830, %v277_v18  }
  0x17   :  { %761 = vmatpush3.xpose.msk.msra.mxu0 %vm93_vm0, %v48_v13 }
  0x18   :  { %762 = vmatprep.subr.msk.mxu0 %vm93_vm0, %v47_v16  ;;  %286 = vperm.xlu0 %829, %v276_v20  }
  0x19   :  { %281 = vperm.xlu1 %830, %v275_v21  }
  0x1b   :  { %763 = vmatpush3.xpose.msk.msra.mxu0 %vm93_vm0, %v47_v16 }
  0x1c   :  { %764 = vmatprep.subr.msk.mxu0 %vm93_vm0, %v46_v19  ;;  %426 = vperm.xlu0 %829, %v408_v23  }
  0x1d   :  { %421 = vperm.xlu1 %830, %v407_v24  }
  0x1f   :  { %765 = vmatpush3.xpose.msk.msra.mxu0 %vm93_vm0, %v46_v19 }
  0x20   :  { %766 = vmatprep.subr.msk.mxu0 %vm93_vm0, %v45_v22  ;;  %416 = vperm.xlu0 %829, %v406_v26   ;;  %v403_v26 = vld [vmem:[%s1158_s7 + $0x10] sm:$0xff] }
  0x21   :  { %411 = vperm.xlu1 %830, %v405_v27   ;;  %v404_v27 = vld [vmem:[%s1158_s7 + $0x18] sm:$0xff] }
  0x23   :  { %767 = vmatpush3.xpose.msk.msra.mxu0 %vm93_vm0, %v45_v22 }
  0x24   :  { %768 = vmatprep.subr.msk.mxu0 %vm93_vm0, %v44_v25  ;;  %536 = vperm.xlu0 %829, %v532_v29  }
  0x25   :  { %541 = vperm.xlu1 %830, %v533_v30  }
  0x27   :  { %769 = vmatpush3.xpose.msk.msra.mxu0 %vm93_vm0, %v44_v25  ;;  %v402_v25 = vld [vmem:[%s1158_s7 + $0x8] sm:$0xff] }
  0x28   :  { %770 = vmatprep.subr.msk.mxu0 %vm93_vm0, %v43_v28 }
  0x2b   :  { %771 = vmatpush3.xpose.msk.msra.mxu0 %vm93_vm0, %v43_v28  ;;  %v530_v28 = vld [vmem:[%s1159_s9] sm:$0xff] }
  0x2c   :  { %772 = vmatprep.subr.msk.mxu0 %vm93_vm0, %v42_v31 }
  0x2f   :  { %773 = vmatpush3.xpose.msk.msra.mxu0 %vm93_vm0, %v42_v31 }
  0x30   :  { %774 = vmatprep.subr.msk.mxu0 %vm93_vm0, %v41_v32 }
  0x33   :  { %775 = vmatpush3.xpose.msk.msra.mxu0 %vm93_vm0, %v41_v32 }
  0x34   :  { %776 = vmatprep.subr.msk.mxu0 %vm93_vm0, %v40_v33 }
  0x37   :  { %777 = vmatpush3.xpose.msk.msra.mxu0 %vm93_vm0, %v40_v33 }
  0x38   :  { %778 = vmatprep.subr.msk.mxu0 %vm93_vm0, %v39_v34 }
  0x3b   :  { %779 = vmatpush3.xpose.msk.msra.mxu0 %vm93_vm0, %v39_v34 }
  0x3c   :  { %780 = vmatprep.subr.msk.mxu0 %vm93_vm0, %v38_v35 }
  0x3f   :  { %781 = vmatpush3.xpose.msk.msra.mxu0 %vm93_vm0, %v38_v35 }
  0x42   :  { %783 = vmatmul.mubr.msk.f32.vlgmr.msra.gmra.mxu0 %vm93_vm0, %v56_v36 }
  0x43   :  { %785 = vmatprep.mubr.msk.f32.mxu0 %vm93_vm0, %v57_v37 }
  0x46   :  { %786 = vmatmul.mubr.msk.f32.gmra.mxu0 %vm93_vm0, %v58_v38 }
  0x7f   :  { %v81_v40 = vpop.permute.xlu0 %80 }
  0x80   :  { %v71_v41 = vpop.permute.xlu1 %70  ;;  %v92_v49 = vmul.f32 %v677_v43, %v81_v40 }
  0x81   :  { %v90_v46 = vmul.f32 %v677_v43, %v71_v41 }
  0x83   :  { %v76_v42 = vpop.permute.xlu0 %75 }
  0x84   :  { %v261_v44 = vpop.permute.xlu1 %260  ;;  %v91_v52 = vmul.f32 %v677_v43, %v76_v42 }
  0x87   :  { %v66_v47 = vpop.permute.xlu0 %65 }
  0x88   :  { %v256_v50 = vpop.permute.xlu1 %255  ;;  %v89_v53 = vmul.f32 %v677_v43, %v66_v47 }
  0x8b   :  { %v251_v60 = vpop.permute.xlu0 %250 }
  0x8c   :  { %v246_v0 = vpop.permute.xlu1 %245 }
  0x8f   :  { %v297_v9 = vpop.permute.xlu0 %296 }
  0x90   :  { %v292_v11 = vpop.permute.xlu1 %291 }
  0x93   :  { %v287_v15 = vpop.permute.xlu0 %286 }
  0x94   :  { %v282_v20 = vpop.permute.xlu1 %281 }
  0x97   :  { %v427_v29 = vpop.permute.xlu0 %426 }
  0x98   :  { %v422_v31 = vpop.permute.xlu1 %421 }
  0x9b   :  { %v417_v35 = vpop.permute.xlu0 %416 }
  0x9c   :  { %v412_v40 = vpop.permute.xlu1 %411 }
  0x9f   :  { %v537_v47 = vpop.permute.xlu0 %536 }
 0x102   :  { %v784_v45 = vpop.f32.mrf.mxu0 }
 0x103   :  { %v226_v54 = vadd.f32 %v784_v45, %v90_v46  ;;  %v531_v45 = vld [vmem:[%s1159_s9 + $0x8] sm:$0xff] }
 0x104   :  { %v220_v48 = vpop.f32.mrf.mxu0 }
 0x105   :  { %v221_v57 = vadd.f32 %v220_v48, %v89_v53  ;;  %v264_v61 = vadd.f32 %v251_v60, %v226_v54 }
 0x106   :  { %v787_v51 = vpop.f32.mrf.mxu0 }
 0x107   :  { %v236_v55 = vadd.f32 %v787_v51, %v92_v49  ;;  %v263_v1 = vadd.f32 %v246_v0, %v221_v57  ;;  %v268_v3 = vmax.f32 %v264_v61, 0.0 }
 0x108   :  { %v230_v56 = vpop.f32.mrf.mxu0 }
 0x109   :  { %v231_v58 = vadd.f32 %v230_v56, %v91_v52  ;;  %v266_v59 = vadd.f32 %v261_v44, %v236_v55  ;;  %v267_v4 = vmax.f32 %v263_v1, 0.0 }
 0x10b   :  { %v265_v62 = vadd.f32 %v256_v50, %v231_v58  ;;  %v270_v63 = vmax.f32 %v266_v59, 0.0  ;;  %v542_v50 = vpop.permute.xlu1 %541 }
 0x10d   :  { %v269_v2 = vmax.f32 %v265_v62, 0.0  ;;  %788 = vmatprep.subr.mxu1 %v270_v63 }
 0x10e   :  { %789 = vmatpush3.msra.mxu1 %v270_v63 }
 0x10f   :  { %790 = vmatprep.subr.mxu1 %v269_v2 }
 0x110   :  { %791 = vmatpush3.msra.mxu1 %v269_v2 }
 0x111   :  { %792 = vmatprep.subr.mxu1 %v268_v3 }
 0x112   :  { %793 = vmatpush3.msra.mxu1 %v268_v3 }
 0x113   :  { %794 = vmatprep.subr.mxu1 %v267_v4 }
 0x114   :  { %795 = vmatpush3.msra.mxu1 %v267_v4 }
 0x115   :  { %797 = vmatmul.mubr.msk.f32.vlgmr.msra.gmra.mxu1 %vm299_vm1, %v272_v5 }
 0x116   :  { %799 = vmatprep.mubr.msk.f32.mxu1 %vm299_vm1, %v273_v6 }
 0x119   :  { %800 = vmatmul.mubr.msk.f32.gmra.mxu1 %vm299_vm1, %v274_v7 }
 0x11a   :  { %810 = vmatprep.mubr.msk.f32.mxu1 %vm299_vm1, %v401_v8 }
 0x1d5   :  { %v798_v10 = vpop.f32.mrf.mxu1 }
 0x1d6   :  { %v384_v17 = vadd.f32 %v798_v10, %v287_v15 }
 0x1d7   :  { %v378_v12 = vpop.f32.mrf.mxu1 }
 0x1d8   :  { %v379_v21 = vadd.f32 %v378_v12, %v282_v20  ;;  %v398_v23 = vmax.f32 %v384_v17, 0.0 }
 0x1d9   :  { %v801_v13 = vpop.f32.mrf.mxu1 }
 0x1da   :  { %v394_v14 = vadd.f32 %v801_v13, %v297_v9  ;;  %v397_v24 = vmax.f32 %v379_v21, 0.0 }
 0x1db   :  { %v388_v16 = vpop.f32.mrf.mxu1 }
 0x1dc   :  { %v400_v18 = vmax.f32 %v394_v14, 0.0  ;;  %v389_v19 = vadd.f32 %v388_v16, %v292_v11 }
 0x1de   :  { %v399_v22 = vmax.f32 %v389_v19, 0.0  ;;  %802 = vmatprep.subr.mxu1 %v400_v18 }
 0x1df   :  { %803 = vmatpush3.msra.mxu1 %v400_v18 }
 0x1e0   :  { %804 = vmatprep.subr.mxu1 %v399_v22 }
 0x1e1   :  { %805 = vmatpush3.msra.mxu1 %v399_v22 }
 0x1e2   :  { %806 = vmatprep.subr.mxu1 %v398_v23 }
 0x1e3   :  { %807 = vmatpush3.msra.mxu1 %v398_v23 }
 0x1e4   :  { %808 = vmatprep.subr.mxu1 %v397_v24 }
 0x1e5   :  { %809 = vmatpush3.msra.mxu1 %v397_v24 }
 0x1e6   :  { %811 = vmatmul.mubr.msk.f32.vlgmr.msra.gmra.mxu1 %vm299_vm1, %v402_v25 }
 0x1e7   :  { %813 = vmatprep.mubr.msk.f32.mxu1 %vm299_vm1, %v403_v26 }
 0x1ea   :  { %814 = vmatmul.mubr.msk.f32.gmra.mxu1 %vm299_vm1, %v404_v27 }
 0x1eb   :  { %824 = vmatprep.mubr.msk.f32.mxu1 %vm299_vm1, %v530_v28 }
 0x2a6   :  { %v812_v30 = vpop.f32.mrf.mxu1 }
 0x2a7   :  { %v513_v37 = vadd.f32 %v812_v30, %v417_v35 }
 0x2a8   :  { %v507_v32 = vpop.f32.mrf.mxu1 }
 0x2a9   :  { %v508_v41 = vadd.f32 %v507_v32, %v412_v40  ;;  %v527_v43 = vmax.f32 %v513_v37, 0.0 }
 0x2aa   :  { %v815_v33 = vpop.f32.mrf.mxu1 }
 0x2ab   :  { %v523_v34 = vadd.f32 %v815_v33, %v427_v29  ;;  %v526_v44 = vmax.f32 %v508_v41, 0.0 }
 0x2ac   :  { %v517_v36 = vpop.f32.mrf.mxu1 }
 0x2ad   :  { %v529_v38 = vmax.f32 %v523_v34, 0.0  ;;  %v518_v39 = vadd.f32 %v517_v36, %v422_v31 }
 0x2af   :  { %v528_v42 = vmax.f32 %v518_v39, 0.0  ;;  %816 = vmatprep.subr.mxu1 %v529_v38 }
 0x2b0   :  { %817 = vmatpush3.msra.mxu1 %v529_v38 }
 0x2b1   :  { %818 = vmatprep.subr.mxu1 %v528_v42 }
 0x2b2   :  { %819 = vmatpush3.msra.mxu1 %v528_v42 }
 0x2b3   :  { %820 = vmatprep.subr.mxu1 %v527_v43 }
 0x2b4   :  { %821 = vmatpush3.msra.mxu1 %v527_v43 }
 0x2b5   :  { %822 = vmatprep.subr.mxu1 %v526_v44 }
 0x2b6   :  { %823 = vmatpush3.msra.mxu1 %v526_v44 }
 0x2b7   :  { %825 = vmatmul.mubr.msk.f32.vlgmr.msra.gmra.mxu1 %vm299_vm1, %v531_v45 }
 0x377   :  { %v826_v46 = vpop.f32.mrf.mxu1 }
 0x378   :  { %v622_v51 = vadd.f32 %v826_v46, %v542_v50 }
 0x379   :  { %v616_v48 = vpop.f32.mrf.mxu1 }
 0x37a   :  { %v617_v49 = vadd.f32 %v616_v48, %v537_v47 }
 0x37c   :  { %625 = vxpose.xlu0.b32.start [1/2] (short) %v617_v49, 128 }
 0x380   :  { %626 = vxpose.xlu0.b32.end [2/2] (short) %v622_v51, 128 }
 0x3f8   :  { %v641_v52 = vpop.trf.xlu0 }
 0x3f9   :  { %657 = vst.msk [vmem:[%s1160_s11] sm:$0xff] %vm93_vm0, %v641_v52 }
 0x3fc   :  { %v642_v53 = vpop.trf.xlu0 }
 0x3fd   :  { %658 = vst.msk [vmem:[%s1160_s11 + $0x8] sm:$0xff] %vm93_vm0, %v642_v53 }
 0x400   :  { %v643_v54 = vpop.trf.xlu0 }
 0x401   :  { %659 = vst.msk [vmem:[%s1160_s11 + $0x10] sm:$0xff] %vm93_vm0, %v643_v54 }
 0x404   :  { %v644_v55 = vpop.trf.xlu0 }
 0x405   :  { %660 = vst.msk [vmem:[%s1160_s11 + $0x18] sm:$0xff] %vm93_vm0, %v644_v55 }
 0x408   :  { %v645_v56 = vpop.trf.xlu0 }
 0x409   :  { %661 = vst.msk [vmem:[%s1160_s11 + $0x20] sm:$0xff] %vm93_vm0, %v645_v56 }
 0x40c   :  { %v646_v57 = vpop.trf.xlu0 }
 0x40d   :  { %662 = vst.msk [vmem:[%s1160_s11 + $0x28] sm:$0xff] %vm93_vm0, %v646_v57 }
 0x410   :  { %v647_v58 = vpop.trf.xlu0 }
 0x411   :  { %663 = vst.msk [vmem:[%s1160_s11 + $0x30] sm:$0xff] %vm93_vm0, %v647_v58 }
 0x414   :  { %v648_v59 = vpop.trf.xlu0 }
 0x415   :  { %664 = vst.msk [vmem:[%s1160_s11 + $0x38] sm:$0xff] %vm93_vm0, %v648_v59 }
 0x418   :  { %v649_v60 = vpop.trf.xlu0 }
 0x419   :  { %665 = vst.msk [vmem:[%s1160_s11 + $0x40] sm:$0xff] %vm93_vm0, %v649_v60 }
 0x41c   :  { %v650_v61 = vpop.trf.xlu0 }
 0x41d   :  { %666 = vst.msk [vmem:[%s1160_s11 + $0x48] sm:$0xff] %vm93_vm0, %v650_v61 }
 0x420   :  { %v651_v62 = vpop.trf.xlu0 }
 0x421   :  { %667 = vst.msk [vmem:[%s1160_s11 + $0x50] sm:$0xff] %vm93_vm0, %v651_v62 }
 0x424   :  { %v652_v63 = vpop.trf.xlu0 }
 0x425   :  { %668 = vst.msk [vmem:[%s1160_s11 + $0x58] sm:$0xff] %vm93_vm0, %v652_v63 }
 0x428   :  { %v653_v0 = vpop.trf.xlu0 }
 0x429   :  { %669 = vst.msk [vmem:[%s1160_s11 + $0x60] sm:$0xff] %vm93_vm0, %v653_v0 }
 0x42c   :  { %v654_v1 = vpop.trf.xlu0 }
 0x42d   :  { %670 = vst.msk [vmem:[%s1160_s11 + $0x68] sm:$0xff] %vm93_vm0, %v654_v1 }
 0x430   :  { %v655_v2 = vpop.trf.xlu0 }
 0x431   :  { %671 = vst.msk [vmem:[%s1160_s11 + $0x70] sm:$0xff] %vm93_vm0, %v655_v2 }
 0x434   :  { %v656_v3 = vpop.trf.xlu0 }
 0x435   :  { %672 = vst.msk [vmem:[%s1160_s11 + $0x78] sm:$0xff] %vm93_vm0, %v656_v3 }

</bundles_post_ra>
